<compile_context>
chip_gen: v6e
topology: v6e:2x2x1
jax: 0.10.0
libtpu: 0.0.40
codegen_flags: <defaults>
</compile_context>

<pallas_src>
import functools
import math

import jax
import jax.numpy as jnp
from jax.experimental import pallas as pl
from jax.experimental.pallas import tpu as pltpu

_LOG_2PI = math.log(2.0 * math.pi)


def _round_up(n, m):
    return ((n + m - 1) // m) * m


def _choose_batch_tile(batch, num_samples, latent_dim, itemsize):
    """Batch rows per grid step.

    - keeps the double-buffered eps+z streaming slabs under ~16 MiB (fits every
      chip's default scoped VMEM with headroom for weights/x/log_q);
    - up to 256 rows to fill the 256-wide v6e/v7x MXUs and amortize per-step
      grid overhead;
    - >= 2 grid steps whenever batch > 8 so the "parallel" axis can be split
      across both v7x TensorCores.
    """
    if batch <= 8:
        return batch
    budget = 16 << 20
    per_row = 2 * 2 * num_samples * latent_dim * itemsize   # eps+z, x2 buffers
    rows_budget = max(8, (budget // per_row) // 8 * 8)
    half = max(8, _round_up(pl.cdiv(batch, 2), 8))
    return min(256, rows_budget, half, _round_up(batch, 8))


# ---------------------------------------------------------------------------
# Kernels  (one grid step == one batch tile; all samples handled at once)
# ---------------------------------------------------------------------------
def _mlp_head(x_ref, w1_ref, b1_ref, w2_ref, b2_ref):
    """Sample-invariant conditioning MLP, once per batch tile. f32 accumulate."""
    h = jnp.tanh(
        jnp.dot(x_ref[...], w1_ref[...], preferred_element_type=jnp.float32)
        + b1_ref[...].astype(jnp.float32))                      # (TB, H)
    ms = (jnp.dot(h.astype(w2_ref.dtype), w2_ref[...],
                  preferred_element_type=jnp.float32)
          + b2_ref[...].astype(jnp.float32))                    # (TB, 2L)
    return ms


def _chunk_sums(v, latent_dim, num_samples):
    """Per-sample lane reductions over a flat (TB, S*L) slab using static,
    128-aligned L-chunk slices.  Returns (TB, S)."""
    cols = [jnp.sum(v[:, s * latent_dim:(s + 1) * latent_dim],
                    axis=-1, keepdims=True)
            for s in range(num_samples)]
    return cols[0] if num_samples == 1 else jnp.concatenate(cols, axis=-1)


def _nn_diag_gaussian_fwd_kernel(x_ref, w1_ref, b1_ref, w2_ref, b2_ref,
                                 eps_ref, z_ref, logq_ref,
                                 *, latent_dim, num_samples, transpose_logq):
    ms = _mlp_head(x_ref, w1_ref, b1_ref, w2_ref, b2_ref)
    mean = ms[:, :latent_dim]                                   # (TB, L)
    log_var = ms[:, latent_dim:]                                # (TB, L)
    std = jnp.exp(0.5 * log_var)

    # Lane-tile mean/std across the S sample chunks so the flat (TB, S*L)
    # slab is processed at full vreg occupancy (no S<8 sublane padding).
    mean_t = jnp.tile(mean, (1, num_samples))                   # (TB, S*L)
    std_t = jnp.tile(std, (1, num_samples))
    eps = eps_ref[...].astype(jnp.float32)                      # (TB, S*L)
    z_ref[...] = (mean_t + std_t * eps).astype(z_ref.dtype)

    # log q = -0.5*L*log(2pi) - 0.5*sum(log_var) - 0.5*sum(eps^2)
    sum_log_var = jnp.sum(log_var, axis=-1, keepdims=True)      # (TB, 1)
    sum_eps_sq = _chunk_sums(eps * eps, latent_dim, num_samples)  # (TB, S)
    logq = (-0.5 * latent_dim * _LOG_2PI
            - 0.5 * sum_log_var - 0.5 * sum_eps_sq)             # (TB, S)
    logq_ref[...] = (logq.T if transpose_logq else logq).astype(logq_ref.dtype)


def _nn_diag_gaussian_logprob_kernel(x_ref, w1_ref, b1_ref, w2_ref, b2_ref,
                                     z_ref, logq_ref,
                                     *, latent_dim, num_samples, transpose_logq):
    ms = _mlp_head(x_ref, w1_ref, b1_ref, w2_ref, b2_ref)
    mean = ms[:, :latent_dim]
    log_var = ms[:, latent_dim:]
    inv_var = jnp.exp(-log_var)

    mean_t = jnp.tile(mean, (1, num_samples))                   # (TB, S*L)
    inv_var_t = jnp.tile(inv_var, (1, num_samples))
    z = z_ref[...].astype(jnp.float32)                          # (TB, S*L)
    diff = z - mean_t
    quad = _chunk_sums(diff * diff * inv_var_t, latent_dim, num_samples)
    sum_log_var = jnp.sum(log_var, axis=-1, keepdims=True)
    logq = -0.5 * latent_dim * _LOG_2PI - 0.5 * (sum_log_var + quad)
    logq_ref[...] = (logq.T if transpose_logq else logq).astype(logq_ref.dtype)


# ---------------------------------------------------------------------------
# Wrappers
# ---------------------------------------------------------------------------
def _weight_specs(tb, Dx, H, L):
    rep = lambda b: (0, 0)
    return [
        pl.BlockSpec((tb, Dx), lambda b: (b, 0)),   # x
        pl.BlockSpec((Dx, H), rep),                 # w1
        pl.BlockSpec((1, H), rep),                  # b1
        pl.BlockSpec((H, 2 * L), rep),              # fused head weight
        pl.BlockSpec((1, 2 * L), rep),              # fused head bias
    ]


def _logq_layout(B, S, tb):
    """Lane-dense (S, B) layout when the tile is 128-aligned or whole-batch;
    otherwise fall back to (B, S) (tiny masked write, still correct)."""
    dense = (tb == B) or (tb % 128 == 0)
    if dense:
        return True, jax.ShapeDtypeStruct((S, B), jnp.float32), \
            pl.BlockSpec((S, tb), lambda b: (0, b))
    return False, jax.ShapeDtypeStruct((B, S), jnp.float32), \
        pl.BlockSpec((tb, S), lambda b: (b, 0))


def nn_diag_gaussian_forward(params, x, eps):
    """x: (B, Dx); eps: (B, S, L).  Returns z: (B, S, L), log_q: (B, S)."""
    w1, b1, w2, b2 = params["w1"], params["b1"], params["w2"], params["b2"]
    B, Dx = x.shape
    _, S, L = eps.shape
    H = w1.shape[1]
    assert w2.shape == (H, 2 * L) and b2.shape == (1, 2 * L)

    eps_flat = eps.reshape(B, S * L)            # free (row-major contiguous)
    tb = _choose_batch_tile(B, S, L, eps_flat.dtype.itemsize)
    dense_logq, logq_shape, logq_spec = _logq_layout(B, S, tb)

    kernel = functools.partial(_nn_diag_gaussian_fwd_kernel,
                               latent_dim=L, num_samples=S,
                               transpose_logq=dense_logq)
    z_flat, logq_out = pl.pallas_call(
        kernel,
        out_shape=(
            jax.ShapeDtypeStruct((B, S * L), eps.dtype),
            logq_shape,
        ),
        grid_spec=pltpu.PrefetchScalarGridSpec(
            num_scalar_prefetch=0,
            grid=(pl.cdiv(B, tb),),
            in_specs=_weight_specs(tb, Dx, H, L)
                     + [pl.BlockSpec((tb, S * L), lambda b: (b, 0))],  # eps
            out_specs=[
                pl.BlockSpec((tb, S * L), lambda b: (b, 0)),  # z (flat, dense)
                logq_spec,                                    # log_q
            ],
        ),
        compiler_params=pltpu.CompilerParams(
            dimension_semantics=("parallel",)),
    )(x, w1, b1, w2, b2, eps_flat)
    log_q = logq_out.T if dense_logq else logq_out
    return z_flat.reshape(B, S, L), log_q


def nn_diag_gaussian_log_prob(params, z, x):
    """z: (B, S, L) or (B, L); x: (B, Dx).  Returns log q(z|x): (B, S) or (B,)."""
    # TODO(synk): the PyTorch 2-D path unsqueezes z at dim 0 (shape quirk);
    # here a 2-D z is treated as a single sample per batch element.
    w1, b1, w2, b2 = params["w1"], params["b1"], params["w2"], params["b2"]
    squeeze = (z.ndim == 2)
    if squeeze:
        z = z[:, None, :]
    B, S, L = z.shape
    Dx = x.shape[1]
    H = w1.shape[1]

    z_flat = z.reshape(B, S * L)
    tb = _choose_batch_tile(B, S, L, z_flat.dtype.itemsize)
    dense_logq, logq_shape, logq_spec = _logq_layout(B, S, tb)

    kernel = functools.partial(_nn_diag_gaussian_logprob_kernel,
                               latent_dim=L, num_samples=S,
                               transpose_logq=dense_logq)
    logq_out = pl.pallas_call(
        kernel,
        out_shape=logq_shape,
        grid_spec=pltpu.PrefetchScalarGridSpec(
            num_scalar_prefetch=0,
            grid=(pl.cdiv(B, tb),),
            in_specs=_weight_specs(tb, Dx, H, L)
                     + [pl.BlockSpec((tb, S * L), lambda b: (b, 0))],  # z
            out_specs=logq_spec,
        ),
        compiler_params=pltpu.CompilerParams(
            dimension_semantics=("parallel",)),
    )(x, w1, b1, w2, b2, z_flat)
    logq = logq_out.T if dense_logq else logq_out
    return logq[:, 0] if squeeze else logq


# ---------------------------------------------------------------------------
# Pure-JAX references (for correctness check)
# ---------------------------------------------------------------------------
def _ref_net(params, x):
    h = jnp.tanh(x @ params["w1"] + params["b1"])
    return h @ params["w2"] + params["b2"]


def _ref_forward(params, x, eps):
    L = eps.shape[-1]
    ms = _ref_net(params, x)
    mean, log_var = ms[:, :L], ms[:, L:]
    std = jnp.exp(0.5 * log_var)
    z = mean[:, None, :] + std[:, None, :] * eps
    logq = (-0.5 * L * _LOG_2PI
            - 0.5 * jnp.sum(log_var, axis=-1, keepdims=True)
            - 0.5 * jnp.sum(eps * eps, axis=-1))
    return z, logq


def _ref_log_prob(params, z, x):
    L = z.shape[-1]
    ms = _ref_net(params, x)
    mean, log_var = ms[:, :L], ms[:, L:]
    var = jnp.exp(log_var)
    quad = jnp.sum((z - mean[:, None, :]) ** 2 / var[:, None, :], axis=-1)
    return (-0.5 * L * _LOG_2PI
            - 0.5 * (jnp.sum(log_var, axis=-1, keepdims=True) + quad))


# ---------------------------------------------------------------------------
# Main
# ---------------------------------------------------------------------------
if __name__ == "__main__":
    # Small, TPU-tile-friendly sizes (sublane=8, lane=128 aligned).
    B, Dx, H, L = 8, 128, 128, 128
    S = 2  # num_samples

    key = jax.random.PRNGKey(0)
    kx, keps, k1, k2, k3, k4 = jax.random.split(key, 6)

    params = {
        "w1": 0.05 * jax.random.normal(k1, (Dx, H), jnp.float32),
        "b1": 0.01 * jax.random.normal(k2, (1, H), jnp.float32),
        # fused head: [mean | log_var] columns
        "w2": 0.05 * jax.random.normal(k3, (H, 2 * L), jnp.float32),
        "b2": 0.01 * jax.random.normal(k4, (1, 2 * L), jnp.float32),
    }

    x = jax.random.normal(kx, (B, Dx), jnp.float32)
    eps = jax.random.normal(keps, (B, S, L), jnp.float32)

    # forward: sample z and its log probability (f32 path)
    z, log_q = jax.block_until_ready(nn_diag_gaussian_forward(params, x, eps))
    # log_prob of the drawn samples given x
    log_q2 = jax.block_until_ready(nn_diag_gaussian_log_prob(params, z, x))

    # correctness against pure-JAX references
    z_ref, logq_ref = _ref_forward(params, x, eps)
    logq_lp_ref = _ref_log_prob(params, z_ref, x)

    assert z.shape == (B, S, L) and log_q.shape == (B, S)
    assert jnp.allclose(z, z_ref, atol=1e-4, rtol=1e-4)
    assert jnp.allclose(log_q, logq_ref, atol=1e-3, rtol=1e-4)
    assert jnp.allclose(log_q2, logq_lp_ref, atol=1e-3, rtol=1e-4)
    # log_prob of reparameterized samples must equal forward's log_q
    assert jnp.allclose(log_q2, log_q, atol=1e-2, rtol=1e-3)

    # bf16 I/O path (halves HBM traffic on the dominant eps-in / z-out stream;
    # matmuls run native bf16 on the MXU, accumulation stays f32)
    bf16 = jnp.bfloat16
    params_b = {k: v.astype(bf16) for k, v in params.items()}
    z_b, log_q_b = jax.block_until_ready(
        nn_diag_gaussian_forward(params_b, x.astype(bf16), eps.astype(bf16)))
    assert z_b.shape == (B, S, L) and z_b.dtype == bf16
    assert log_q_b.dtype == jnp.float32
    assert jnp.allclose(z_b.astype(jnp.float32), z_ref, atol=5e-2, rtol=5e-2)
    assert jnp.allclose(log_q_b, logq_ref, atol=1.0, rtol=5e-2)

    print("KERNEL_OK")
</pallas_src>

<mosaic_0001>
module attributes {stable_mosaic.version = 11 : i64} {
  func.func @_nn_diag_gaussian_fwd_kernel(%arg0: i32, %arg1: memref<8x128xf32, #tpu.memory_space<vmem>>, %arg2: memref<128x128xf32, #tpu.memory_space<vmem>>, %arg3: memref<1x128xf32, #tpu.memory_space<vmem>>, %arg4: memref<128x256xf32, #tpu.memory_space<vmem>>, %arg5: memref<1x256xf32, #tpu.memory_space<vmem>>, %arg6: memref<8x256xf32, #tpu.memory_space<vmem>>, %arg7: memref<8x256xf32, #tpu.memory_space<vmem>>, %arg8: memref<2x8xf32, #tpu.memory_space<vmem>>) attributes {dimension_semantics = [#tpu.dimension_semantics<parallel>], iteration_bounds = array<i64: 1>, scalar_prefetch = 0 : i64, scratch_operands = 0 : i64, tpu.core_type = #tpu.core_type<tc>, window_params = [{transform_indices = @transform_0, window_bounds = array<i64: 8, 128>}, {pipeline_mode = #tpu.pipeline_mode<synchronous>, transform_indices = @transform_1, window_bounds = array<i64: 128, 128>}, {pipeline_mode = #tpu.pipeline_mode<synchronous>, transform_indices = @transform_2, window_bounds = array<i64: 1, 128>}, {pipeline_mode = #tpu.pipeline_mode<synchronous>, transform_indices = @transform_3, window_bounds = array<i64: 128, 256>}, {pipeline_mode = #tpu.pipeline_mode<synchronous>, transform_indices = @transform_4, window_bounds = array<i64: 1, 256>}, {transform_indices = @transform_5, window_bounds = array<i64: 8, 256>}, {transform_indices = @transform_6, window_bounds = array<i64: 8, 256>}, {transform_indices = @transform_7, window_bounds = array<i64: 2, 8>}]} {
    %c0 = arith.constant 0 : index
    %c0_0 = arith.constant 0 : index
    %0 = vector.load %arg1[%c0, %c0_0] : memref<8x128xf32, #tpu.memory_space<vmem>>, vector<8x128xf32>
    %c0_1 = arith.constant 0 : index
    %c0_2 = arith.constant 0 : index
    %1 = vector.load %arg2[%c0_1, %c0_2] : memref<128x128xf32, #tpu.memory_space<vmem>>, vector<128x128xf32>
    %cst = arith.constant dense<0.000000e+00> : vector<8x128xf32>
    %2 = tpu.matmul %0, %1, %cst {dimension_numbers = #tpu.dot_dimension_numbers<[1], [0], [0], [1], [0, 0, 1, 1], [], []>} : vector<8x128xf32>, vector<128x128xf32>, vector<8x128xf32> -> vector<8x128xf32>
    %c0_3 = arith.constant 0 : index
    %c0_4 = arith.constant 0 : index
    %3 = vector.load %arg3[%c0_3, %c0_4] : memref<1x128xf32, #tpu.memory_space<vmem>>, vector<1x128xf32>
    %4 = vector.broadcast %3 : vector<1x128xf32> to vector<8x128xf32>
    %5 = arith.addf %2, %4 : vector<8x128xf32>
    %6 = math.tanh %5 : vector<8x128xf32>
    %c0_5 = arith.constant 0 : index
    %c0_6 = arith.constant 0 : index
    %7 = vector.load %arg4[%c0_5, %c0_6] : memref<128x256xf32, #tpu.memory_space<vmem>>, vector<128x256xf32>
    %cst_7 = arith.constant dense<0.000000e+00> : vector<8x256xf32>
    %8 = tpu.matmul %6, %7, %cst_7 {dimension_numbers = #tpu.dot_dimension_numbers<[1], [0], [0], [1], [0, 0, 1, 1], [], []>} : vector<8x128xf32>, vector<128x256xf32>, vector<8x256xf32> -> vector<8x256xf32>
    %c0_8 = arith.constant 0 : index
    %c0_9 = arith.constant 0 : index
    %9 = vector.load %arg5[%c0_8, %c0_9] : memref<1x256xf32, #tpu.memory_space<vmem>>, vector<1x256xf32>
    %10 = vector.broadcast %9 : vector<1x256xf32> to vector<8x256xf32>
    %11 = arith.addf %8, %10 : vector<8x256xf32>
    %12 = vector.extract_strided_slice %11 {offsets = [0, 0], sizes = [8, 128], strides = [1, 1]} : vector<8x256xf32> to vector<8x128xf32>
    %13 = vector.extract_strided_slice %11 {offsets = [0, 128], sizes = [8, 128], strides = [1, 1]} : vector<8x256xf32> to vector<8x128xf32>
    %cst_10 = arith.constant 5.000000e-01 : f32
    %14 = vector.broadcast %cst_10 : f32 to vector<8x128xf32>
    %15 = arith.mulf %14, %13 : vector<8x128xf32>
    %16 = math.exp %15 : vector<8x128xf32>
    %17 = tpu.concatenate %12, %12 in 1 : vector<8x128xf32>, vector<8x128xf32> -> vector<8x256xf32>
    %18 = tpu.concatenate %16, %16 in 1 : vector<8x128xf32>, vector<8x128xf32> -> vector<8x256xf32>
    %c0_11 = arith.constant 0 : index
    %c0_12 = arith.constant 0 : index
    %19 = vector.load %arg6[%c0_11, %c0_12] : memref<8x256xf32, #tpu.memory_space<vmem>>, vector<8x256xf32>
    %20 = arith.mulf %18, %19 : vector<8x256xf32>
    %21 = arith.addf %17, %20 : vector<8x256xf32>
    %c0_13 = arith.constant 0 : index
    %c0_14 = arith.constant 0 : index
    %22 = vector.load %arg7[%c0_13, %c0_14] : memref<8x256xf32, #tpu.memory_space<vmem>>, vector<8x256xf32>
    tpu.vector_store %arg7[%c0_13, %c0_14], %21 {strides = array<i32>} : memref<8x256xf32, #tpu.memory_space<vmem>>, vector<8x256xf32>,
    %cst_15 = arith.constant dense<0.000000e+00> : vector<8xf32>
    %23 = vector.multi_reduction <add>, %13, %cst_15 [1] : vector<8x128xf32> to vector<8xf32>
    %24 = vector.shape_cast %23 : vector<8xf32> to vector<8x1xf32>
    %25 = arith.mulf %19, %19 : vector<8x256xf32>
    %26 = vector.extract_strided_slice %25 {offsets = [0, 0], sizes = [8, 128], strides = [1, 1]} : vector<8x256xf32> to vector<8x128xf32>
    %cst_16 = arith.constant dense<0.000000e+00> : vector<8xf32>
    %27 = vector.multi_reduction <add>, %26, %cst_16 [1] : vector<8x128xf32> to vector<8xf32>
    %28 = vector.shape_cast %27 : vector<8xf32> to vector<8x1xf32>
    %29 = vector.extract_strided_slice %25 {offsets = [0, 128], sizes = [8, 128], strides = [1, 1]} : vector<8x256xf32> to vector<8x128xf32>
    %cst_17 = arith.constant dense<0.000000e+00> : vector<8xf32>
    %30 = vector.multi_reduction <add>, %29, %cst_17 [1] : vector<8x128xf32> to vector<8xf32>
    %31 = vector.shape_cast %30 : vector<8xf32> to vector<8x1xf32>
    %32 = tpu.concatenate %28, %31 in 1 : vector<8x1xf32>, vector<8x1xf32> -> vector<8x2xf32>
    %cst_18 = arith.constant 5.000000e-01 : f32
    %33 = vector.broadcast %cst_18 : f32 to vector<8x1xf32>
    %34 = arith.mulf %33, %24 : vector<8x1xf32>
    %cst_19 = arith.constant -117.62413 : f32
    %35 = vector.broadcast %cst_19 : f32 to vector<8x1xf32>
    %36 = arith.subf %35, %34 : vector<8x1xf32>
    %cst_20 = arith.constant 5.000000e-01 : f32
    %37 = vector.broadcast %cst_20 : f32 to vector<8x2xf32>
    %38 = arith.mulf %37, %32 : vector<8x2xf32>
    %39 = vector.broadcast %36 : vector<8x1xf32> to vector<8x2xf32>
    %40 = arith.subf %39, %38 : vector<8x2xf32>
    %41 = tpu.transpose %40, [1, 0] : vector<8x2xf32> -> vector<2x8xf32>
    %c0_21 = arith.constant 0 : index
    %c0_22 = arith.constant 0 : index
    %42 = vector.load %arg8[%c0_21, %c0_22] : memref<2x8xf32, #tpu.memory_space<vmem>>, vector<2x8xf32>
    tpu.vector_store %arg8[%c0_21, %c0_22], %41 {strides = array<i32>} : memref<2x8xf32, #tpu.memory_space<vmem>>, vector<2x8xf32>,
    return
  }
  func.func @transform_0(%arg0: i32) -> (i32, i32) {
    %c0_i32 = arith.constant 0 : i32
    %c0_i32_0 = arith.constant 0 : i32
    return %arg0, %c0_i32 : i32, i32
  }
  func.func @transform_1(%arg0: i32) -> (i32, i32) {
    %c0_i32 = arith.constant 0 : i32
    %c0_i32_0 = arith.constant 0 : i32
    %c0_i32_1 = arith.constant 0 : i32
    return %c0_i32, %c0_i32_0 : i32, i32
  }
  func.func @transform_2(%arg0: i32) -> (i32, i32) {
    %c0_i32 = arith.constant 0 : i32
    %c0_i32_0 = arith.constant 0 : i32
    %c0_i32_1 = arith.constant 0 : i32
    return %c0_i32, %c0_i32_0 : i32, i32
  }
  func.func @transform_3(%arg0: i32) -> (i32, i32) {
    %c0_i32 = arith.constant 0 : i32
    %c0_i32_0 = arith.constant 0 : i32
    %c0_i32_1 = arith.constant 0 : i32
    return %c0_i32, %c0_i32_0 : i32, i32
  }
  func.func @transform_4(%arg0: i32) -> (i32, i32) {
    %c0_i32 = arith.constant 0 : i32
    %c0_i32_0 = arith.constant 0 : i32
    %c0_i32_1 = arith.constant 0 : i32
    return %c0_i32, %c0_i32_0 : i32, i32
  }
  func.func @transform_5(%arg0: i32) -> (i32, i32) {
    %c0_i32 = arith.constant 0 : i32
    %c0_i32_0 = arith.constant 0 : i32
    return %arg0, %c0_i32 : i32, i32
  }
  func.func @transform_6(%arg0: i32) -> (i32, i32) {
    %c0_i32 = arith.constant 0 : i32
    %c0_i32_0 = arith.constant 0 : i32
    return %arg0, %c0_i32 : i32, i32
  }
  func.func @transform_7(%arg0: i32) -> (i32, i32) {
    %c0_i32 = arith.constant 0 : i32
    %c0_i32_0 = arith.constant 0 : i32
    return %c0_i32, %arg0 : i32, i32
  }
}

</mosaic_0001>

<bundles_post_ra>
// kernel: tpu_custom_call.1
= control target key start
LH: loop header
LB: loop body
LE: loop exit
PB: predicated region body
PF: predicated region fallthrough
CT: control target
= control target key end

     0   :  { %13 = vsyncpa [#allocation3], 0  ;;  %s671_s0 = inlined_call_operand.hbm [shape: f32[8,128], index: 0, kind: input, shape index: {}]   ;;  %s672_s1 = inlined_call_operand.hbm [shape: f32[128,128], index: 1, kind: input, shape index: {}]   ;;  %s673_s2 = inlined_call_operand.vmem [shape: f32[1,128], index: 2, kind: input, shape index: {}]   ;;  %s674_s3 = inlined_call_operand.hbm [shape: f32[128,256], index: 3, kind: input, shape index: {}]   ;;  %s675_s4 = inlined_call_operand.vmem [shape: f32[1,256], index: 4, kind: input, shape index: {}]   ;;  %s676_s5 = inlined_call_operand.hbm [shape: f32[8,256], index: 5, kind: input, shape index: {}]   ;;  %s677_s6 = inlined_call_operand.hbm [shape: f32[8,256], index: 6, kind: output, shape index: {0}]   ;;  %s678_s7 = inlined_call_operand.hbm [shape: f32[2,8], index: 7, kind: output, shape index: {1}]  }
   0x1   :  { %14 = vsyncpa [#allocation6], 0 }
   0x2   :  { %15 = vsyncpa [#allocation9], 0 }
   0x3   :  { %16 = vsyncpa [#allocation4], 0 }
   0x4   :  { %17 = vsyncpa [#allocation12], 0  ;;  %s577_s24 = smov [#allocation5]  }
   0x5   :  { %s33_s25 = sshll.u32 %s577_s24, 4  ;;  %s34_s25 = int_to_ptr.vmem [resolvable:$true] %s33_s25 }
   0x6   :  { %s455_s26 = scalar_lea.vmem %s34_s25, 2048  ;;  %p460_p1 = scmp.lt.s32.totalorder %s34_s25, %s34_s25 }
   0x7   :  { %p456_p0 = scmp.ne.s32.totalorder %s34_s25, %s455_s26  ;;  %p461_p2 = scmp.lt.s32.totalorder %s455_s26, %s455_s26 }
   0x9   :  { %p462_p3 = por %p461_p2, %p460_p1 }
   0xb   :  { %p463_p4 = pnand %p462_p3, %p456_p0 }
   0xd   :  { %466 = shalt.err (!%p463_p4)
}
   0xe   :  { %s578_s27 = smov 128   ;;  %s579_s28 = smov 8  }
   0xf   :  { %39 = dma.hbm_to_vmem [thread:$0]  %s672_s1, 2048, %s34_s25, [#allocation6], %s578_s27, %s578_s27, %s579_s28  }
  0x10   :  { %s580_s8 = smov [#allocation2]   ;;  %s581_s10 = smov [#allocation7]  }
  0x11   :  { %s24_s9 = sshll.u32 %s580_s8, 4  ;;  %s47_s11 = sshll.u32 %s581_s10, 4  ;;  %s25_s9 = int_to_ptr.vmem [resolvable:$true] %s24_s9  ;;  %s48_s11 = int_to_ptr.vmem [resolvable:$true] %s47_s11 }
  0x12   :  { %s475_s12 = scalar_lea.vmem %s25_s9, 128  ;;  %p480_p6 = scmp.lt.s32.totalorder %s25_s9, %s25_s9 }
  0x13   :  { %p476_p5 = scmp.ne.s32.totalorder %s25_s9, %s475_s12  ;;  %p481_p7 = scmp.lt.s32.totalorder %s475_s12, %s475_s12 }
  0x15   :  { %p482_p8 = por %p481_p7, %p480_p6 }
  0x17   :  { %p483_p9 = pnand %p482_p8, %p476_p5 }
  0x19   :  { %486 = shalt.err (!%p483_p9)
}
  0x1a   :  { %27 = dma.hbm_to_vmem [thread:$0]  %s671_s0, 128, %s25_s9, [#allocation3]  }
  0x1b   :  { %s495_s15 = scalar_lea.vmem %s48_s11, 4096  ;;  %p500_p11 = scmp.lt.s32.totalorder %s48_s11, %s48_s11 }
  0x1c   :  { %p496_p10 = scmp.ne.s32.totalorder %s48_s11, %s495_s15  ;;  %p501_p12 = scmp.lt.s32.totalorder %s495_s15, %s495_s15 }
  0x1e   :  { %p502_p13 = por %p501_p12, %p500_p11 }
  0x20   :  { %p503_p0 = pnand %p502_p13, %p496_p10 }
  0x22   :  { %506 = shalt.err (!%p503_p0)
}
  0x23   :  { %s582_s1 = smov 256   ;;  %s583_s16 = smov 16  }
  0x24   :  { %53 = dma.hbm_to_vmem [thread:$0]  %s674_s3, 4096, %s48_s11, [#allocation6], %s582_s1, %s582_s1, %s583_s16  }
  0x25   :  { %s584_s19 = smov [#allocation8]  }
  0x26   :  { %s62_s20 = sshll.u32 %s584_s19, 4  ;;  %s63_s20 = int_to_ptr.vmem [resolvable:$true] %s62_s20 }
  0x27   :  { %s515_s21 = scalar_lea.vmem %s63_s20, 256  ;;  %p520_p2 = scmp.lt.s32.totalorder %s63_s20, %s63_s20 }
  0x28   :  { %p516_p1 = scmp.ne.s32.totalorder %s63_s20, %s515_s21  ;;  %p521_p3 = scmp.lt.s32.totalorder %s515_s21, %s515_s21 }
  0x2a   :  { %p522_p4 = por %p521_p3, %p520_p2 }
  0x2c   :  { %p523_p5 = pnand %p522_p4, %p516_p1 }
  0x2e   :  { %526 = shalt.err (!%p523_p5)
}
  0x2f   :  { %65 = dma.hbm_to_vmem [thread:$0]  %s676_s5, 256, %s63_s20, [#allocation9]  }
  0x30   :  { %567 = dma.done.wait [#allocation3], 128  }
  0x31   :  { %568 = vsyncadd [#allocation3], 4294967168 }
  0x32   :  { %569 = dma.done.wait [#allocation6], 6144  }
  0x33   :  { %570 = vsyncadd [#allocation6], 4294961152 }
  0x34   :  { %571 = dma.done.wait [#allocation9], 256  }
  0x35   :  { %572 = vsyncadd [#allocation9], 4294967040  ;;  %v585_v0 = vmov 0.0   ;;  %vm586_vm0 = vmmov 0   ;;  %v94_v1 = vld [vmem:[#allocation5 + $0x78] sm:$0xff]  ;;  %v93_v2 = vld [vmem:[#allocation5 + $0x70] sm:$0xff]  ;;  %v207_v57 = vlaneseq }
  0x36   :  { %396 = vmatprep.subr.mxu0 %v585_v0  ;;  %428 = vmatprep.mubr.msk.f32.mxu0 %vm586_vm0, %v585_v0  ;;  %v92_v3 = vld [vmem:[#allocation5 + $0x68] sm:$0xff]  ;;  %v91_v4 = vld [vmem:[#allocation5 + $0x60] sm:$0xff]  ;;  %v90_v5 = vld [vmem:[#allocation5 + $0x58] sm:$0xff]  ;;  %vm307_vm1 = vcmask 7168  }
  0x37   :  { %281 = vmatprep.mubr.f32.mxu1 %v585_v0  ;;  %397 = vmatpush3.msra.mxu0 %v94_v1  ;;  %v204_v6 = vld [vmem:[#allocation7 + $0xf8] sm:$0xff]  ;;  %v203_v7 = vld [vmem:[#allocation7 + $0xf0] sm:$0xff]  ;;  %v202_v8 = vld [vmem:[#allocation7 + $0xe8] sm:$0xff]  ;;  %v208_v58 = vshrl.u32 %v207_v57, 7 }
  0x38   :  { %398 = vmatprep.subr.mxu0 %v585_v0  ;;  %217 = vmatprep.subr.mxu1 %v204_v6  ;;  %v201_v9 = vld [vmem:[#allocation7 + $0xe0] sm:$0xff]  ;;  %v200_v10 = vld [vmem:[#allocation7 + $0xd8] sm:$0xff]  ;;  %v89_v11 = vld [vmem:[#allocation5 + $0x50] sm:$0xff] }
  0x39   :  { %399 = vmatpush3.msra.mxu0 %v93_v2  ;;  %218 = vmatpush1.msra.mxu1 %v203_v7  ;;  %v199_v12 = vld [vmem:[#allocation7 + $0xd0] sm:$0xff]  ;;  %v198_v13 = vld [vmem:[#allocation7 + $0xc8] sm:$0xff]  ;;  %v197_v15 = vld [vmem:[#allocation7 + $0xc0] sm:$0xff]  ;;  %v213_v59 = vsub.s32 1, %v208_v58 }
  0x3a   :  { %400 = vmatprep.subr.mxu0 %v585_v0  ;;  %219 = vmatprep.subr.mxu1 %v202_v8  ;;  %v88_v14 = vld [vmem:[#allocation5 + $0x48] sm:$0xff]  ;;  %v196_v16 = vld [vmem:[#allocation7 + $0xb8] sm:$0xff]  ;;  %v87_v17 = vld [vmem:[#allocation5 + $0x40] sm:$0xff] }
  0x3b   :  { %401 = vmatpush3.msra.mxu0 %v92_v3  ;;  %220 = vmatpush1.msra.mxu1 %v201_v9  ;;  %v195_v18 = vld [vmem:[#allocation7 + $0xb0] sm:$0xff]  ;;  %v194_v19 = vld [vmem:[#allocation7 + $0xa8] sm:$0xff]  ;;  %v86_v20 = vld [vmem:[#allocation5 + $0x38] sm:$0xff] }
  0x3c   :  { %402 = vmatprep.subr.mxu0 %v585_v0  ;;  %221 = vmatprep.subr.mxu1 %v200_v10  ;;  %v193_v21 = vld [vmem:[#allocation7 + $0xa0] sm:$0xff]  ;;  %v192_v22 = vld [vmem:[#allocation7 + $0x98] sm:$0xff]  ;;  %v85_v23 = vld [vmem:[#allocation5 + $0x30] sm:$0xff] }
  0x3d   :  { %403 = vmatpush3.msra.mxu0 %v91_v4  ;;  %222 = vmatpush1.msra.mxu1 %v199_v12  ;;  %v191_v24 = vld [vmem:[#allocation7 + $0x90] sm:$0xff]  ;;  %v190_v25 = vld [vmem:[#allocation7 + $0x88] sm:$0xff]  ;;  %v83_v27 = vld [vmem:[#allocation5 + $0x20] sm:$0xff] }
  0x3e   :  { %404 = vmatprep.subr.mxu0 %v585_v0  ;;  %223 = vmatprep.subr.mxu1 %v198_v13  ;;  %v84_v26 = vld [vmem:[#allocation5 + $0x28] sm:$0xff]  ;;  %v82_v28 = vld [vmem:[#allocation5 + $0x18] sm:$0xff]  ;;  %v81_v29 = vld [vmem:[#allocation5 + $0x10] sm:$0xff] }
  0x3f   :  { %405 = vmatpush3.msra.mxu0 %v90_v5  ;;  %224 = vmatpush1.msra.mxu1 %v197_v15  ;;  %v80_v30 = vld [vmem:[#allocation5 + $0x8] sm:$0xff]  ;;  %v79_v31 = vld [vmem:[#allocation5] sm:$0xff]  ;;  %v78_v32 = vld [vmem:[#allocation2] sm:$0xff]  ;;  %v209_v5 = vsub.s32 0, %v208_v58 }
  0x40   :  { %406 = vmatprep.subr.mxu0 %v585_v0  ;;  %225 = vmatprep.subr.mxu1 %v196_v16  ;;  %v189_v33 = vld [vmem:[#allocation7 + $0x80] sm:$0xff]  ;;  %v188_v34 = vld [vmem:[#allocation7 + $0x78] sm:$0xff]  ;;  %v187_v35 = vld [vmem:[#allocation7 + $0x70] sm:$0xff] }
  0x41   :  { %407 = vmatpush3.msra.mxu0 %v89_v11  ;;  %226 = vmatpush1.msra.mxu1 %v195_v18  ;;  %v186_v36 = vld [vmem:[#allocation7 + $0x68] sm:$0xff]  ;;  %v185_v37 = vld [vmem:[#allocation7 + $0x60] sm:$0xff]  ;;  %v184_v38 = vld [vmem:[#allocation7 + $0x58] sm:$0xff] }
  0x42   :  { %408 = vmatprep.subr.mxu0 %v585_v0  ;;  %227 = vmatprep.subr.mxu1 %v194_v19  ;;  %v183_v39 = vld [vmem:[#allocation7 + $0x50] sm:$0xff]  ;;  %v182_v40 = vld [vmem:[#allocation7 + $0x48] sm:$0xff]  ;;  %v181_v41 = vld [vmem:[#allocation7 + $0x40] sm:$0xff] }
  0x43   :  { %409 = vmatpush3.msra.mxu0 %v88_v14  ;;  %228 = vmatpush1.msra.mxu1 %v193_v21  ;;  %v180_v42 = vld [vmem:[#allocation7 + $0x38] sm:$0xff]  ;;  %v179_v43 = vld [vmem:[#allocation7 + $0x30] sm:$0xff]  ;;  %v178_v44 = vld [vmem:[#allocation7 + $0x28] sm:$0xff] }
  0x44   :  { %410 = vmatprep.subr.mxu0 %v585_v0  ;;  %229 = vmatprep.subr.mxu1 %v192_v22  ;;  %v177_v45 = vld [vmem:[#allocation7 + $0x20] sm:$0xff]  ;;  %v176_v46 = vld [vmem:[#allocation7 + $0x18] sm:$0xff]  ;;  %v175_v47 = vld [vmem:[#allocation7 + $0x10] sm:$0xff] }
  0x45   :  { %411 = vmatpush3.msra.mxu0 %v87_v17  ;;  %230 = vmatpush1.msra.mxu1 %v191_v24  ;;  %v174_v48 = vld [vmem:[#allocation7 + $0x8] sm:$0xff]  ;;  %v173_v49 = vld [vmem:[#allocation7] sm:$0xff]  ;;  %v378_v50 = vld [vmem:[%s673_s2] ss:$0 sm:$0xff]  ;;  %s587_s2 = smov [#allocation10]  }
  0x46   :  { %412 = vmatprep.subr.mxu0 %v585_v0  ;;  %231 = vmatprep.subr.mxu1 %v190_v25  ;;  %v292_v55 = vld [vmem:[#allocation8 + $0x8] sm:$0xff]  ;;  %v205_v60 = vld [vmem:[%s675_s4] sm:$0x3]  ;;  %s353_s4 = sshll.u32 %s587_s2, 4  ;;  %s354_s4 = int_to_ptr.vmem [resolvable:$true] %s353_s4 }
  0x47   :  { %413 = vmatpush3.msra.mxu0 %v86_v20  ;;  %232 = vmatpush1.msra.mxu1 %v189_v33  ;;  %v302_v56 = vmul.f32 %v292_v55, %v292_v55  ;;  %v214_v61 = vrot.slane %v205_v60, %v213_v59  ;;  %v210_v6 = vrot.slane %v205_v60, %v209_v5  ;;  %s527_s25 = scalar_lea.vmem %s354_s4, 256  ;;  %p532_p7 = scmp.lt.s32.totalorder %s354_s4, %s354_s4 }
  0x48   :  { %414 = vmatprep.subr.mxu0 %v585_v0  ;;  %233 = vmatprep.subr.mxu1 %v188_v34  ;;  %p528_p6 = scmp.ne.s32.totalorder %s354_s4, %s527_s25  ;;  %p533_p8 = scmp.lt.s32.totalorder %s527_s25, %s527_s25 }
  0x49   :  { %415 = vmatpush3.msra.mxu0 %v85_v23  ;;  %234 = vmatpush1.msra.mxu1 %v187_v35 }
  0x4a   :  { %416 = vmatprep.subr.mxu0 %v585_v0  ;;  %235 = vmatprep.subr.mxu1 %v186_v36  ;;  %p534_p9 = por %p533_p8, %p532_p7 }
  0x4b   :  { %417 = vmatpush3.msra.mxu0 %v84_v26  ;;  %236 = vmatpush1.msra.mxu1 %v185_v37 }
  0x4c   :  { %418 = vmatprep.subr.mxu0 %v585_v0  ;;  %237 = vmatprep.subr.mxu1 %v184_v38  ;;  %p535_p10 = pnand %p534_p9, %p528_p6 }
  0x4d   :  { %419 = vmatpush3.msra.mxu0 %v83_v27  ;;  %238 = vmatpush1.msra.mxu1 %v183_v39 }
  0x4e   :  { %420 = vmatprep.subr.mxu0 %v585_v0  ;;  %239 = vmatprep.subr.mxu1 %v182_v40 }
  0x4f   :  { %421 = vmatpush3.msra.mxu0 %v82_v28  ;;  %240 = vmatpush1.msra.mxu1 %v181_v41 }
  0x50   :  { %422 = vmatprep.subr.mxu0 %v585_v0  ;;  %241 = vmatprep.subr.mxu1 %v180_v42 }
  0x51   :  { %423 = vmatpush3.msra.mxu0 %v81_v29  ;;  %242 = vmatpush1.msra.mxu1 %v179_v43 }
  0x52   :  { %424 = vmatprep.subr.mxu0 %v585_v0  ;;  %243 = vmatprep.subr.mxu1 %v178_v44 }
  0x53   :  { %425 = vmatpush3.msra.mxu0 %v80_v30  ;;  %244 = vmatpush1.msra.mxu1 %v177_v45 }
  0x54   :  { %426 = vmatprep.subr.mxu0 %v585_v0  ;;  %245 = vmatprep.subr.mxu1 %v176_v46  ;;  %v291_v0 = vld [vmem:[#allocation8] sm:$0xff] }
  0x55   :  { %427 = vmatpush3.msra.mxu0 %v79_v31  ;;  %246 = vmatpush1.msra.mxu1 %v175_v47  ;;  %v301_v3 = vmul.f32 %v291_v0, %v291_v0 }
  0x56   :  { %429 = vmatmul.mubr.f32.vlgmr.msra.gmra.mxu0 %v78_v32  ;;  %247 = vmatprep.subr.mxu1 %v174_v48 }
  0x57   :  { %248 = vmatpush1.msra.mxu1 %v173_v49  ;;  %305 = vadd.xlane.f32.xlu1 %v302_v56 }
  0xe0   :  { %v306_v15 = vpop.xlane.xlu1 %305 }
 0x116   :  { %v168_v51 = vpop.f32.mrf.mxu0 }
 0x117   :  { %v169_v52 = vadd.f32 %v378_v50, %v168_v51 }
 0x118   :  { %v430_v53 = vpop.f32.mrf.mxu0 }
 0x119   :  { %443 = vtanh.f32 %v169_v52 }
 0x126   :  { %v444_v54 = vpop.eup %443 }
 0x127   :  { %282 = vmatmul.mubr.f32.vlgmr.msra.gmra.mxu1 %v444_v54 }
 0x1e7   :  { %v283_v62 = vpop.f32.mrf.mxu1 }
 0x1e8   :  { %v284_v8 = vadd.f32 %v283_v62, %v210_v6 }
 0x1e9   :  { %v285_v63 = vpop.f32.mrf.mxu1 }
 0x1ea   :  { %v286_v1 = vadd.f32 %v285_v63, %v214_v61 }
 0x1ec   :  { %v288_v2 = vmul.f32 0.5, %v286_v1  ;;  %299 = vadd.xlane.f32.xlu0 %v286_v1 }
 0x1ee   :  { %v289_v4 = vmul.f32 1.442695, %v288_v2 }
 0x1f0   :  { %445 = vpow2.f32 %v289_v4  ;;  %303 = vadd.xlane.f32.xlu0 %v301_v3 }
 0x1fd   :  { %v446_v7 = vpop.eup %445 }
 0x1fe   :  { %v294_v9 = vmul.f32 %v446_v7, %v292_v55  ;;  %v293_v10 = vmul.f32 %v446_v7, %v291_v0 }
 0x200   :  { %v296_v11 = vadd.f32 %v294_v9, %v284_v8  ;;  %v295_v12 = vadd.f32 %v293_v10, %v284_v8 }
 0x202   :  { %298 = vst [vmem:[#allocation10 + $0x8] sm:$0xff] %v296_v11  ;;  %297 = vst [vmem:[#allocation10] sm:$0xff] %v295_v12 }
 0x275   :  { %v300_v13 = vpop.xlane.xlu0 %299 }
 0x276   :  { %v309_v14 = vmul.f32 0.5, %v300_v13 }
 0x278   :  { %v310_v18 = vsub.f32 -117.62413, %v309_v14 }
 0x279   :  { %v304_v16 = vpop.xlane.xlu0 %303 }
 0x27a   :  { %v308_v17 = vsel %vm307_vm1, %v304_v16, %v306_v15 }
 0x27b   :  { %v311_v19 = vmul.f32 0.5, %v308_v17 }
 0x27d   :  { %v312_v20 = vsub.f32 %v310_v18, %v311_v19 }
 0x27e   :  { %538 = shalt.err (!%p535_p10)
}
 0x27f   :  { %356 = dma.vmem_to_hbm [thread:$0]  %s354_s4, 256, %s677_s6, [#allocation4]   ;;  %313 = vxpose.xlu1.b32.start.end [1/1] (short) (narrow) %v312_v20, 8  ;;  %vm345_vm2 = vcmask 58368  }
 0x280   :  { %s588_s28 = smov [#allocation11]  }
 0x281   :  { %s363_s29 = sshll.u32 %s588_s28, 4  ;;  %s364_s29 = int_to_ptr.vmem [resolvable:$true] %s363_s29 }
 0x282   :  { %s547_s30 = scalar_lea.vmem %s364_s29, 32  ;;  %p552_p12 = scmp.lt.s32.totalorder %s364_s29, %s364_s29 }
 0x283   :  { %p548_p11 = scmp.ne.s32.totalorder %s364_s29, %s547_s30  ;;  %p553_p13 = scmp.lt.s32.totalorder %s547_s30, %s547_s30 }
 0x285   :  { %p554_p0 = por %p553_p13, %p552_p12 }
 0x287   :  { %p555_p1 = pnand %p554_p0, %p548_p11 }
 0x2fb   :  { %v329_v21 = vpop.trf.xlu1 }
 0x2fc   :  { %346 = vst.msk [vmem:[#allocation11] sm:$0x3] %vm345_vm2, %v329_v21 }
 0x2fd   :  { %558 = shalt.err (!%p555_p1)
}
 0x2fe   :  { %366 = dma.vmem_to_hbm [thread:$0]  %s364_s29, 32, %s678_s7, [#allocation12]  }
 0x2ff   :  { %573 = dma.done.wait [#allocation4], 256  }
 0x300   :  { %574 = vsyncadd [#allocation4], 4294967040 }
 0x301   :  { %575 = dma.done.wait [#allocation12], 32  }
 0x302   :  { %576 = vsyncadd [#allocation12], 4294967264 }
 0x303   :  { %373 = vsyncpa [#allocation3], 1 }
 0x304   :  { %374 = vsyncpa [#allocation6], 1 }
 0x305   :  { %375 = vsyncpa [#allocation9], 1 }
 0x306   :  { %376 = vsyncpa [#allocation4], 1 }
 0x307   :  { %377 = vsyncpa [#allocation12], 1 }

</bundles_post_ra>
